<compile_context>
chip_gen: v5e
topology: v5e:2x2
jax: 0.10.0
libtpu: 0.0.40
codegen_flags: <defaults>
</compile_context>

<pallas_src>
import jax
import jax.numpy as jnp
from jax.experimental import pallas as pl
from jax.experimental.pallas import tpu as pltpu


def _round_up(a, m):
    return ((a + m - 1) // m) * m


def mlp_kernel(x_ref, w1a_ref, w2_ref, b2_ref, w3_ref, b3_ref, o_ref):
    """Activations are (features, T) with the batch on the lane axis."""
    x = x_ref[...]                                                  # (1, T)

    # Layer 1 on the MXU with bias folded in: [w1 | b1] @ [x ; 1].
    xa = jnp.concatenate([x, jnp.ones_like(x)], axis=0)             # (2, T)
    h1 = jnp.dot(w1a_ref[...], xa, preferred_element_type=jnp.float32)
    h1 = jnp.maximum(h1, 0.0)                                       # (16, T)

    # Layer 2: real MXU matmul, bias broadcast on the VPU.
    h2 = jnp.dot(w2_ref[...], h1, preferred_element_type=jnp.float32) + b2_ref[...]
    h2 = jnp.maximum(h2, 0.0)                                       # (8, T)

    # Layer 3: (1,8)@(8,T) on the MXU, scalar bias add.
    out = jnp.dot(w3_ref[...], h2, preferred_element_type=jnp.float32) + b3_ref[...]
    o_ref[...] = out.astype(o_ref.dtype)                            # (1, T)


def my_module1_forward(x, params, tile_n=32768):
    """x: (N, 1) float32.  params in torch nn.Linear layout (w: (out,in), b: (out,))."""
    w1, b1 = params["w1"], params["b1"]        # (16, 1), (16,)
    w2, b2 = params["w2"], params["b2"]        # (8, 16), (8,)
    w3, b3 = params["w3"], params["b3"]        # (1, 8),  (1,)
    n = x.shape[0]

    # Lane-dense layout: batch on the lane (last) axis, tile a multiple of 128.
    tile = min(_round_up(tile_n, 128), _round_up(n, 128))
    n_pad = _round_up(n, tile)

    x_row = x.reshape(1, n)
    xt = x_row if n_pad == n else jnp.pad(x_row, ((0, 0), (0, n_pad - n)))

    # Pack layer-1 weight+bias so layer 1 runs as a single MXU matmul; biases
    # become columns that broadcast against (features, T) activations.
    w1a = jnp.concatenate([w1, b1.reshape(-1, 1)], axis=1)           # (16, 2)
    b2c = b2.reshape(-1, 1)                                          # (8, 1)
    b3c = b3.reshape(1, 1)                                           # (1, 1)

    def resident(a):  # full-array block; stays in VMEM across all grid steps
        return pl.BlockSpec(a.shape, lambda i: (0, 0))

    out_t = pl.pallas_call(
        mlp_kernel,
        out_shape=jax.ShapeDtypeStruct((1, n_pad), jnp.float32),
        grid=(n_pad // tile,),
        in_specs=[
            pl.BlockSpec((1, tile), lambda i: (0, i)),   # x tile, lane-dense
            resident(w1a), resident(w2), resident(b2c),
            resident(w3), resident(b3c),
        ],
        out_specs=pl.BlockSpec((1, tile), lambda i: (0, i)),
        compiler_params=pltpu.CompilerParams(
            dimension_semantics=("parallel",),           # independent N tiles
            vmem_limit_bytes=32 * 1024 * 1024,           # safe on v5e/v6e/v7x
        ),
    )(xt, w1a, w2, b2c, w3, b3c)

    if n_pad == n:                       # aligned path: no pad, no slice copy
        return out_t.reshape(n, 1)
    return out_t[0, :n].reshape(n, 1)    # drop bias-only padded lanes


def init_params(key):
    """Deterministic init matching nn.Linear shapes: w (out,in), b (out,)."""
    ks = jax.random.split(key, 6)

    def linear(kw, kb, fan_in, fan_out):
        bound = 1.0 / float(fan_in) ** 0.5
        w = jax.random.uniform(kw, (fan_out, fan_in), jnp.float32, -bound, bound)
        b = jax.random.uniform(kb, (fan_out,), jnp.float32, -bound, bound)
        return w, b

    w1, b1 = linear(ks[0], ks[1], 1, 16)
    w2, b2 = linear(ks[2], ks[3], 16, 8)
    w3, b3 = linear(ks[4], ks[5], 8, 1)
    return {"w1": w1, "b1": b1, "w2": w2, "b2": b2, "w3": w3, "b3": b3}


def reference_forward(x, p):
    h1 = jnp.maximum(x @ p["w1"].T + p["b1"], 0.0)   # (N, 16)
    h2 = jnp.maximum(h1 @ p["w2"].T + p["b2"], 0.0)  # (N, 8)
    return h2 @ p["w3"].T + p["b3"]                  # (N, 1)


if __name__ == "__main__":
    key = jax.random.PRNGKey(0)
    params = init_params(key)

    # Same input as the original script: column vector 1..13, shape (13, 1).
    x = jnp.arange(1.0, 14.0, dtype=jnp.float32).reshape(13, 1)
    out = jax.block_until_ready(my_module1_forward(x, params))
    ref = reference_forward(x, params)
    assert out.shape == (13, 1), out.shape
    assert jnp.allclose(out, ref, atol=1e-4, rtol=1e-4), (out, ref)

    # Exercise the multi-step tiled path (padding + 3 grid steps) at small size.
    x2 = jax.random.normal(jax.random.PRNGKey(0), (300, 1), jnp.float32)
    out2 = jax.block_until_ready(my_module1_forward(x2, params, tile_n=128))
    ref2 = reference_forward(x2, params)
    assert out2.shape == (300, 1), out2.shape
    assert jnp.allclose(out2, ref2, atol=1e-4, rtol=1e-4), "tiled path mismatch"

    print("KERNEL_OK")
</pallas_src>

<mosaic_0001>
module attributes {stable_mosaic.version = 11 : i64} {
  func.func @mlp_kernel(%arg0: i32, %arg1: memref<1x128xf32, #tpu.memory_space<vmem>>, %arg2: memref<16x2xf32, #tpu.memory_space<vmem>>, %arg3: memref<8x16xf32, #tpu.memory_space<vmem>>, %arg4: memref<8x1xf32, #tpu.memory_space<vmem>>, %arg5: memref<1x8xf32, #tpu.memory_space<vmem>>, %arg6: memref<1x1xf32, #tpu.memory_space<vmem>>, %arg7: memref<1x128xf32, #tpu.memory_space<vmem>>) attributes {dimension_semantics = [#tpu.dimension_semantics<parallel>], iteration_bounds = array<i64: 1>, scalar_prefetch = 0 : i64, scratch_operands = 0 : i64, tpu.core_type = #tpu.core_type<tc>, window_params = [{transform_indices = @transform_0, window_bounds = array<i64: 1, 128>}, {pipeline_mode = #tpu.pipeline_mode<synchronous>, transform_indices = @transform_1, window_bounds = array<i64: 16, 2>}, {pipeline_mode = #tpu.pipeline_mode<synchronous>, transform_indices = @transform_2, window_bounds = array<i64: 8, 16>}, {pipeline_mode = #tpu.pipeline_mode<synchronous>, transform_indices = @transform_3, window_bounds = array<i64: 8, 1>}, {pipeline_mode = #tpu.pipeline_mode<synchronous>, transform_indices = @transform_4, window_bounds = array<i64: 1, 8>}, {pipeline_mode = #tpu.pipeline_mode<synchronous>, transform_indices = @transform_5, window_bounds = array<i64: 1, 1>}, {transform_indices = @transform_6, window_bounds = array<i64: 1, 128>}]} {
    %c0 = arith.constant 0 : index
    %c0_0 = arith.constant 0 : index
    %0 = vector.load %arg1[%c0, %c0_0] : memref<1x128xf32, #tpu.memory_space<vmem>>, vector<1x128xf32>
    %cst = arith.constant 1.000000e+00 : f32
    %1 = vector.broadcast %cst : f32 to vector<1x128xf32>
    %2 = tpu.concatenate %0, %1 in 0 : vector<1x128xf32>, vector<1x128xf32> -> vector<2x128xf32>
    %c0_1 = arith.constant 0 : index
    %c0_2 = arith.constant 0 : index
    %3 = vector.load %arg2[%c0_1, %c0_2] : memref<16x2xf32, #tpu.memory_space<vmem>>, vector<16x2xf32>
    %cst_3 = arith.constant dense<0.000000e+00> : vector<16x128xf32>
    %4 = tpu.matmul %3, %2, %cst_3 {dimension_numbers = #tpu.dot_dimension_numbers<[1], [0], [0], [1], [0, 0, 1, 1], [], []>} : vector<16x2xf32>, vector<2x128xf32>, vector<16x128xf32> -> vector<16x128xf32>
    %cst_4 = arith.constant 0.000000e+00 : f32
    %5 = vector.broadcast %cst_4 : f32 to vector<16x128xf32>
    %6 = arith.maximumf %4, %5 : vector<16x128xf32>
    %c0_5 = arith.constant 0 : index
    %c0_6 = arith.constant 0 : index
    %7 = vector.load %arg3[%c0_5, %c0_6] : memref<8x16xf32, #tpu.memory_space<vmem>>, vector<8x16xf32>
    %cst_7 = arith.constant dense<0.000000e+00> : vector<8x128xf32>
    %8 = tpu.matmul %7, %6, %cst_7 {dimension_numbers = #tpu.dot_dimension_numbers<[1], [0], [0], [1], [0, 0, 1, 1], [], []>} : vector<8x16xf32>, vector<16x128xf32>, vector<8x128xf32> -> vector<8x128xf32>
    %c0_8 = arith.constant 0 : index
    %c0_9 = arith.constant 0 : index
    %9 = vector.load %arg4[%c0_8, %c0_9] : memref<8x1xf32, #tpu.memory_space<vmem>>, vector<8x1xf32>
    %10 = vector.broadcast %9 : vector<8x1xf32> to vector<8x128xf32>
    %11 = arith.addf %8, %10 : vector<8x128xf32>
    %cst_10 = arith.constant 0.000000e+00 : f32
    %12 = vector.broadcast %cst_10 : f32 to vector<8x128xf32>
    %13 = arith.maximumf %11, %12 : vector<8x128xf32>
    %c0_11 = arith.constant 0 : index
    %c0_12 = arith.constant 0 : index
    %14 = vector.load %arg5[%c0_11, %c0_12] : memref<1x8xf32, #tpu.memory_space<vmem>>, vector<1x8xf32>
    %cst_13 = arith.constant dense<0.000000e+00> : vector<1x128xf32>
    %15 = tpu.matmul %14, %13, %cst_13 {dimension_numbers = #tpu.dot_dimension_numbers<[1], [0], [0], [1], [0, 0, 1, 1], [], []>} : vector<1x8xf32>, vector<8x128xf32>, vector<1x128xf32> -> vector<1x128xf32>
    %c0_14 = arith.constant 0 : index
    %c0_15 = arith.constant 0 : index
    %16 = vector.load %arg6[%c0_14, %c0_15] : memref<1x1xf32, #tpu.memory_space<vmem>>, vector<1x1xf32>
    %17 = vector.broadcast %16 : vector<1x1xf32> to vector<1x128xf32>
    %18 = arith.addf %15, %17 : vector<1x128xf32>
    %c0_16 = arith.constant 0 : index
    %c0_17 = arith.constant 0 : index
    %19 = vector.load %arg7[%c0_16, %c0_17] : memref<1x128xf32, #tpu.memory_space<vmem>>, vector<1x128xf32>
    tpu.vector_store %arg7[%c0_16, %c0_17], %18 {strides = array<i32>} : memref<1x128xf32, #tpu.memory_space<vmem>>, vector<1x128xf32>,
    return
  }
  func.func @transform_0(%arg0: i32) -> (i32, i32) {
    %c0_i32 = arith.constant 0 : i32
    %c0_i32_0 = arith.constant 0 : i32
    return %c0_i32, %arg0 : i32, i32
  }
  func.func @transform_1(%arg0: i32) -> (i32, i32) {
    %c0_i32 = arith.constant 0 : i32
    %c0_i32_0 = arith.constant 0 : i32
    %c0_i32_1 = arith.constant 0 : i32
    return %c0_i32, %c0_i32_0 : i32, i32
  }
  func.func @transform_2(%arg0: i32) -> (i32, i32) {
    %c0_i32 = arith.constant 0 : i32
    %c0_i32_0 = arith.constant 0 : i32
    %c0_i32_1 = arith.constant 0 : i32
    return %c0_i32, %c0_i32_0 : i32, i32
  }
  func.func @transform_3(%arg0: i32) -> (i32, i32) {
    %c0_i32 = arith.constant 0 : i32
    %c0_i32_0 = arith.constant 0 : i32
    %c0_i32_1 = arith.constant 0 : i32
    return %c0_i32, %c0_i32_0 : i32, i32
  }
  func.func @transform_4(%arg0: i32) -> (i32, i32) {
    %c0_i32 = arith.constant 0 : i32
    %c0_i32_0 = arith.constant 0 : i32
    %c0_i32_1 = arith.constant 0 : i32
    return %c0_i32, %c0_i32_0 : i32, i32
  }
  func.func @transform_5(%arg0: i32) -> (i32, i32) {
    %c0_i32 = arith.constant 0 : i32
    %c0_i32_0 = arith.constant 0 : i32
    %c0_i32_1 = arith.constant 0 : i32
    return %c0_i32, %c0_i32_0 : i32, i32
  }
  func.func @transform_6(%arg0: i32) -> (i32, i32) {
    %c0_i32 = arith.constant 0 : i32
    %c0_i32_0 = arith.constant 0 : i32
    return %c0_i32, %arg0 : i32, i32
  }
}

</mosaic_0001>

<bundles_post_ra>
// kernel: tpu_custom_call.1
= control target key start
LH: loop header
LB: loop body
LE: loop exit
PB: predicated region body
PF: predicated region fallthrough
CT: control target
= control target key end

     0   :  { %s244_s0 = inlined_call_operand.vmem [shape: f32[1,128], index: 0, kind: input, shape index: {}]   ;;  %s245_s1 = inlined_call_operand.vmem [shape: f32[16,2], index: 1, kind: input, shape index: {}]   ;;  %s246_s2 = inlined_call_operand.vmem [shape: f32[8,16], index: 2, kind: input, shape index: {}]   ;;  %s247_s3 = inlined_call_operand.vmem [shape: f32[8,1], index: 3, kind: input, shape index: {}]   ;;  %s248_s4 = inlined_call_operand.vmem [shape: f32[1,8], index: 4, kind: input, shape index: {}]   ;;  %s249_s5 = inlined_call_operand.<no memory space> [shape: f32[1,1], index: 5, kind: input, shape index: {}]   ;;  %s250_s6 = inlined_call_operand.hbm [shape: f32[1,128], index: 6, kind: output, shape index: {}]  }
   0x1   :  { %v11_v0 = vstv %s249_s5 }
   0x2   :  { %12 = vst [vmem:[#allocation2] sm:$0x1] %v11_v0 }
   0x3   :  { %v26_v1 = vld [vmem:[%s244_s0] sm:$0x1]  ;;  %vm27_vm0 = vcmask 1040384   ;;  %vm38_vm1 = vcmask 1041408   ;;  %v30_v2 = vld [vmem:[%s245_s1 + $0x8] sm:$0xff]  ;;  %vm31_vm2 = vcmask 15360  }
   0x4   :  { %v28_v3 = vsel %vm27_vm0, %v26_v1, 1.0  ;;  %v29_v4 = vld [vmem:[%s245_s1] sm:$0xff] }
   0x5   :  { %13 = vsyncpa [#allocation4], 0  ;;  %153 = vmatpush.msk.msra.mxu3 %vm38_vm1, %v28_v3  ;;  %148 = vmatpush.msk.msra.mxu0 %vm38_vm1, %v28_v3  ;;  %v68_v5 = vld [vmem:[%s247_s3] sm:$0xff]  ;;  %v183_v6 = vmov 0   ;;  %vm74_vm3 = vcmask 130048   ;;  %vm107_vm4 = vcmask 64512  }
   0x6   :  { %150 = vmatmul.msk.f32.vlgmr.msra.gmra.mxu3 %vm31_vm2, %v30_v2  ;;  %149 = vmatmul.msk.f32.vlgmr.msra.gmra.mxu0 %vm31_vm2, %v29_v4  ;;  %v67_v12 = vld [vmem:[%s246_s2] sm:$0xff]  ;;  %s184_s7 = smov [#allocation3]   ;;  %s139_s2 = sshll.u32 %s250_s6, 4  ;;  %s140_s2 = int_to_ptr.hbm [resolvable:$true] %s139_s2 }
   0x7   :  { %156 = vset.pattern.permute.xlu0 %v183_v6  ;;  %v99_v17 = vld [vmem:[%s248_s4] sm:$0x1]  ;;  %s137_s8 = sshll.u32 %s184_s7, 4  ;;  %s138_s8 = int_to_ptr.vmem [resolvable:$true] %s137_s8 }
   0x8   :  { %71 = vperm.xlu0 %156, %v68_v5  }
   0x9   :  { %v100_v7 = vld [vmem:[#allocation2] sm:$0x1] }
  0x10   :  { %103 = vperm.xlu0 %156, %v100_v7  }
  0x7a   :  { %v72_v13 = vpop.permute.xlu0 %71 }
  0x82   :  { %v104_v18 = vpop.permute.xlu0 %103 }
  0x83   :  { %v59_v8 = vpop.f32.mrf.mxu0  ;;  %v106_v19 = vperm.slane %v104_v18, 0 }
  0x84   :  { %v65_v11 = vmax.f32 %v59_v8, 0.0 }
  0x89   :  { %v62_v9 = vpop.f32.mrf.mxu3 }
  0x8a   :  { %v66_v10 = vmax.f32 %v62_v9, 0.0 }
  0x8c   :  { %92 = vmatpush.msra.mxu1 %v66_v10 }
  0x8e   :  { %93 = vmatpush.msra.mxu1 %v65_v11 }
  0x8f   :  { %151 = vmatmul.msk.f32.vlgmr.msra.gmra.mxu1 %vm74_vm3, %v67_v12 }
 0x10c   :  { %v95_v14 = vpop.f32.mrf.mxu1 }
 0x10d   :  { %v96_v15 = vadd.f32 %v95_v14, %v72_v13 }
 0x10f   :  { %v98_v16 = vmax.f32 %v96_v15, 0.0 }
 0x111   :  { %126 = vmatpush.msra.mxu2 %v98_v16 }
 0x112   :  { %152 = vmatmul.msk.f32.vlgmr.msra.gmra.mxu2 %vm107_vm4, %v99_v17 }
 0x195   :  { %v128_v20 = vpop.f32.mrf.mxu2 }
 0x196   :  { %v129_v21 = vadd.f32 %v128_v20, %v106_v19 }
 0x198   :  { %131 = vst [vmem:[#allocation3] sm:$0x1] %v129_v21 }
 0x199   :  { %142 = dma.vmem_to_hbm [thread:$0]  %s138_s8, 16, %s140_s2, [#allocation4]  }
 0x19a   :  { %181 = dma.done.wait [#allocation4], 16  }
 0x19b   :  { %182 = vsyncadd [#allocation4], 4294967280 }
 0x19c   :  { %147 = vsyncpa [#allocation4], 1 }

</bundles_post_ra>
